<compile_context>
chip_gen: v5e
topology: v5e:2x2
jax: 0.10.0
libtpu: 0.0.40
codegen_flags: <defaults>
</compile_context>

<pallas_src>
import math

import jax
import jax.numpy as jnp
from jax.experimental import pallas as pl
from jax.experimental.pallas import tpu as pltpu


def make_pe_table(max_seq_len: int, d_model: int) -> jnp.ndarray:
    """Replicates the PyTorch __init__ table exactly (float32). Used as reference."""
    assert d_model % 2 == 0
    i_seq = jnp.linspace(0.0, max_seq_len - 1, max_seq_len, dtype=jnp.float32)
    j_seq = jnp.linspace(0.0, d_model - 2, d_model // 2, dtype=jnp.float32)
    pos, two_i = jnp.meshgrid(i_seq, j_seq, indexing="ij")  # torch default 'ij'
    inv = pos / jnp.power(10000.0, two_i / d_model)
    pe_2i = jnp.sin(inv)
    pe_2i_1 = jnp.cos(inv)
    pe = jnp.stack((pe_2i, pe_2i_1), axis=2).reshape(max_seq_len, d_model)
    return pe.astype(jnp.float32)


def _round_up(x: int, m: int) -> int:
    return (x + m - 1) // m * m


def _cdiv(a: int, b: int) -> int:
    return -(-a // b)


def _pe_kernel(t_ref, expand_ref, denom_ref, out_ref):
    # t_ref:      (tile_rows, g)  int32  -- g token positions folded per output row
    # expand_ref: (g, W)          f32    -- 0/1 selector, W = g * d_model
    # denom_ref:  (1, W)          f32    -- 10000**(2i/d_model), tiled per token slot
    # out_ref:    (tile_rows, W)  f32    -- lane-dense folded encodings
    pos = t_ref[...].astype(jnp.float32)                            # (R, g)

    # Exact lane expansion on the MXU: pos_w[r, k] = pos[r, k // d_model].
    # (0/1 selector times small integer-valued f32 positions -> exact.)
    pos_w = jnp.dot(pos, expand_ref[...],
                    preferred_element_type=jnp.float32)             # (R, W)

    # Same arithmetic as the table: pos / 10000**(2i/d_model), then sin / cos.
    arg = pos_w / denom_ref[...]                                     # (R, W)
    lane = jax.lax.broadcasted_iota(jnp.int32, arg.shape, 1)
    is_cos = (lane % 2) == 1   # d_model is even, so lane parity == channel parity
    out_ref[...] = jnp.where(is_cos, jnp.cos(arg), jnp.sin(arg)).astype(out_ref.dtype)


def positional_encoding(t: jnp.ndarray, *, d_model: int = 20,
                        tile_rows: int = 256) -> jnp.ndarray:
    """Equivalent of PositionalEncoding.forward(t): returns pe[t] with pe computed
    on the fly inside the kernel (identical sin/cos table arithmetic)."""
    assert d_model % 2 == 0
    orig_shape = t.shape
    t_flat = t.reshape(-1).astype(jnp.int32)
    n = t_flat.shape[0]

    # Fold g tokens per output row so the output row width W is a multiple of 128.
    g = math.lcm(d_model, 128) // d_model
    W = g * d_model

    tile_rows = max(8, _round_up(tile_rows, 8))
    n_rows = _round_up(_cdiv(max(n, 1), g), 8)        # sublane-aligned row count
    tile_rows = min(tile_rows, n_rows)
    n_rows = _round_up(n_rows, tile_rows)
    n_pad = n_rows * g
    if n_pad != n:
        t_flat = jnp.pad(t_flat, (0, n_pad - n))      # padded tokens -> pos 0, sliced off
    t_2d = t_flat.reshape(n_rows, g)

    # Tiny constants (resident across the grid; ~80 KiB at d_model=20).
    k = jnp.arange(W, dtype=jnp.int32)
    expand = (k[None, :] // d_model == jnp.arange(g, dtype=jnp.int32)[:, None]
              ).astype(jnp.float32)                                  # (g, W)
    two_i = (2 * ((k % d_model) // 2)).astype(jnp.float32)
    denom = jnp.power(10000.0, two_i / d_model).astype(jnp.float32)[None, :]  # (1, W)

    grid = (n_rows // tile_rows,)

    out_folded = pl.pallas_call(
        _pe_kernel,
        out_shape=jax.ShapeDtypeStruct((n_rows, W), jnp.float32),
        grid_spec=pltpu.PrefetchScalarGridSpec(
            num_scalar_prefetch=0,
            grid=grid,
            in_specs=[
                pl.BlockSpec((tile_rows, g), lambda i: (i, 0)),   # per-tile positions
                pl.BlockSpec((g, W), lambda i: (0, 0)),           # constant selector
                pl.BlockSpec((1, W), lambda i: (0, 0)),           # constant denominators
            ],
            out_specs=pl.BlockSpec((tile_rows, W), lambda i: (i, 0)),
        ),
        compiler_params=pltpu.CompilerParams(
            dimension_semantics=("parallel",),
        ),
    )(t_2d, expand, denom)

    # Free reshape: (n_rows, g*d_model) row-major == (n_rows*g, d_model).
    out = out_folded.reshape(n_pad, d_model)[:n]
    return out.reshape(*orig_shape, d_model)


if __name__ == "__main__":
    MAX_SEQ_LEN = 64
    D_MODEL = 20          # module default width (keeps the lane-dense fold non-trivial)
    B, S = 2, 8

    key = jax.random.PRNGKey(0)
    t = jax.random.randint(key, (B, S), 0, MAX_SEQ_LEN, dtype=jnp.int32)

    out = positional_encoding(t, d_model=D_MODEL)
    out = jax.block_until_ready(out)

    # Reference: the exact PyTorch-style table gather.
    pe = make_pe_table(MAX_SEQ_LEN, D_MODEL)
    ref = pe[t]

    assert out.shape == (B, S, D_MODEL)
    assert out.dtype == jnp.float32
    assert jnp.allclose(out, ref, atol=1e-4, rtol=1e-4)

    print("KERNEL_OK")
</pallas_src>

<mosaic_0001>
module attributes {stable_mosaic.version = 11 : i64} {
  func.func @_pe_kernel(%arg0: i32, %arg1: memref<8x32xi32, #tpu.memory_space<vmem>>, %arg2: memref<32x640xf32, #tpu.memory_space<vmem>>, %arg3: memref<1x640xf32, #tpu.memory_space<vmem>>, %arg4: memref<8x640xf32, #tpu.memory_space<vmem>>) attributes {dimension_semantics = [#tpu.dimension_semantics<parallel>], iteration_bounds = array<i64: 1>, scalar_prefetch = 0 : i64, scratch_operands = 0 : i64, tpu.core_type = #tpu.core_type<tc>, window_params = [{transform_indices = @transform_0, window_bounds = array<i64: 8, 32>}, {pipeline_mode = #tpu.pipeline_mode<synchronous>, transform_indices = @transform_1, window_bounds = array<i64: 32, 640>}, {pipeline_mode = #tpu.pipeline_mode<synchronous>, transform_indices = @transform_2, window_bounds = array<i64: 1, 640>}, {transform_indices = @transform_3, window_bounds = array<i64: 8, 640>}]} {
    %c0 = arith.constant 0 : index
    %c0_0 = arith.constant 0 : index
    %0 = vector.load %arg1[%c0, %c0_0] : memref<8x32xi32, #tpu.memory_space<vmem>>, vector<8x32xi32>
    %1 = arith.sitofp %0 : vector<8x32xi32> to vector<8x32xf32>
    %c0_1 = arith.constant 0 : index
    %c0_2 = arith.constant 0 : index
    %2 = vector.load %arg2[%c0_1, %c0_2] : memref<32x640xf32, #tpu.memory_space<vmem>>, vector<32x640xf32>
    %cst = arith.constant dense<0.000000e+00> : vector<8x640xf32>
    %3 = tpu.matmul %1, %2, %cst {dimension_numbers = #tpu.dot_dimension_numbers<[1], [0], [0], [1], [0, 0, 1, 1], [], []>} : vector<8x32xf32>, vector<32x640xf32>, vector<8x640xf32> -> vector<8x640xf32>
    %c0_3 = arith.constant 0 : index
    %c0_4 = arith.constant 0 : index
    %4 = vector.load %arg3[%c0_3, %c0_4] : memref<1x640xf32, #tpu.memory_space<vmem>>, vector<1x640xf32>
    %5 = vector.broadcast %4 : vector<1x640xf32> to vector<8x640xf32>
    %6 = arith.divf %3, %5 : vector<8x640xf32>
    %7 = tpu.iota {dimensions = array<i32: 1>} : vector<8x640xi32>
    %c2_i32 = arith.constant 2 : i32
    %c0_i32 = arith.constant 0 : i32
    %8 = arith.cmpi eq, %c2_i32, %c0_i32 : i32
    %c1_i32 = arith.constant 1 : i32
    %9 = arith.select %8, %c1_i32, %c2_i32 : i32
    %10 = vector.broadcast %9 : i32 to vector<8x640xi32>
    %11 = arith.remsi %7, %10 : vector<8x640xi32>
    %c0_i32_5 = arith.constant 0 : i32
    %12 = vector.broadcast %c0_i32_5 : i32 to vector<8x640xi32>
    %13 = arith.cmpi ne, %11, %12 : vector<8x640xi32>
    %c0_i32_6 = arith.constant 0 : i32
    %14 = vector.broadcast %c0_i32_6 : i32 to vector<8x640xi32>
    %15 = arith.cmpi slt, %11, %14 : vector<8x640xi32>
    %c0_i32_7 = arith.constant 0 : i32
    %16 = arith.cmpi slt, %9, %c0_i32_7 : i32
    %17 = vector.broadcast %16 : i1 to vector<8x640xi1>
    %18 = vector.broadcast %17 : vector<8x640xi1> to vector<8x640xi1>
    %19 = arith.xori %15, %18 : vector<8x640xi1>
    %20 = arith.andi %19, %13 : vector<8x640xi1>
    %21 = vector.broadcast %9 : i32 to vector<8x640xi32>
    %22 = arith.addi %11, %21 : vector<8x640xi32>
    %23 = arith.select %20, %22, %11 : vector<8x640xi1>, vector<8x640xi32>
    %c1_i32_8 = arith.constant 1 : i32
    %24 = vector.broadcast %c1_i32_8 : i32 to vector<8x640xi32>
    %25 = arith.cmpi eq, %23, %24 : vector<8x640xi32>
    %26 = math.cos %6 : vector<8x640xf32>
    %27 = math.sin %6 : vector<8x640xf32>
    %28 = arith.select %25, %26, %27 : vector<8x640xi1>, vector<8x640xf32>
    %c0_9 = arith.constant 0 : index
    %c0_10 = arith.constant 0 : index
    %29 = vector.load %arg4[%c0_9, %c0_10] : memref<8x640xf32, #tpu.memory_space<vmem>>, vector<8x640xf32>
    tpu.vector_store %arg4[%c0_9, %c0_10], %28 {strides = array<i32>} : memref<8x640xf32, #tpu.memory_space<vmem>>, vector<8x640xf32>,
    return
  }
  func.func @transform_0(%arg0: i32) -> (i32, i32) {
    %c0_i32 = arith.constant 0 : i32
    %c0_i32_0 = arith.constant 0 : i32
    return %arg0, %c0_i32 : i32, i32
  }
  func.func @transform_1(%arg0: i32) -> (i32, i32) {
    %c0_i32 = arith.constant 0 : i32
    %c0_i32_0 = arith.constant 0 : i32
    %c0_i32_1 = arith.constant 0 : i32
    return %c0_i32, %c0_i32_0 : i32, i32
  }
  func.func @transform_2(%arg0: i32) -> (i32, i32) {
    %c0_i32 = arith.constant 0 : i32
    %c0_i32_0 = arith.constant 0 : i32
    %c0_i32_1 = arith.constant 0 : i32
    return %c0_i32, %c0_i32_0 : i32, i32
  }
  func.func @transform_3(%arg0: i32) -> (i32, i32) {
    %c0_i32 = arith.constant 0 : i32
    %c0_i32_0 = arith.constant 0 : i32
    return %arg0, %c0_i32 : i32, i32
  }
}

</mosaic_0001>

<bundles_post_ra>
// kernel: tpu_custom_call.1
= control target key start
LH: loop header
LB: loop body
LE: loop exit
PB: predicated region body
PF: predicated region fallthrough
CT: control target
= control target key end

     0   :  { %8 = vsyncpa [#allocation3], 0  ;;  %s2760_s0 = inlined_call_operand.hbm [shape: s32[8,32], index: 0, kind: input, shape index: {}]   ;;  %s2761_s1 = inlined_call_operand.hbm [shape: f32[32,640], index: 1, kind: input, shape index: {}]   ;;  %s2762_s2 = inlined_call_operand.hbm [shape: f32[1,640], index: 2, kind: input, shape index: {}]   ;;  %s2763_s3 = inlined_call_operand.hbm [shape: f32[8,640], index: 3, kind: output, shape index: {}]  }
   0x1   :  { %9 = vsyncpa [#allocation6], 0  ;;  %s26_s14 = sshll.u32 %s2761_s1, 4  ;;  %s27_s14 = int_to_ptr.hbm [resolvable:$true] %s26_s14 }
   0x2   :  { %10 = vsyncpa [#allocation4], 0  ;;  %s2075_s15 = smov [#allocation5]   ;;  %s16_s19 = sshll.u32 %s2760_s0, 4  ;;  %s17_s19 = int_to_ptr.hbm [resolvable:$true] %s16_s19 }
   0x3   :  { %s28_s16 = sshll.u32 %s2075_s15, 4  ;;  %s2076_s20 = smov 640   ;;  %s29_s16 = int_to_ptr.vmem [resolvable:$true] %s28_s16 }
   0x4   :  { %s2077_s21 = smov 40   ;;  %s2078_s22 = smov [#allocation2]  }
   0x5   :  { %34 = dma.hbm_to_vmem [thread:$0]  %s27_s14, 2560, %s29_s16, [#allocation6], %s2076_s20, %s2076_s20, %s2077_s21  }
   0x6   :  { %s18_s23 = sshll.u32 %s2078_s22, 4  ;;  %s40_s26 = sshll.u32 %s2762_s2, 4  ;;  %s19_s23 = int_to_ptr.vmem [resolvable:$true] %s18_s23  ;;  %s41_s26 = int_to_ptr.hbm [resolvable:$true] %s40_s26 }
   0x7   :  { %21 = dma.hbm_to_vmem [thread:$0]  %s17_s19, 128, %s19_s23, [#allocation3]  }
   0x8   :  { %s2079_s1 = smov [#allocation7]  }
   0x9   :  { %s42_s27 = sshll.u32 %s2079_s1, 4  ;;  %s43_s27 = int_to_ptr.vmem [resolvable:$true] %s42_s27 }
   0xa   :  { %45 = dma.hbm_to_vmem [thread:$0]  %s41_s26, 80, %s43_s27, [#allocation6]  }
   0xb   :  { %2069 = dma.done.wait [#allocation3], 128  }
   0xc   :  { %2070 = vsyncadd [#allocation3], 4294967168 }
   0xd   :  { %2071 = dma.done.wait [#allocation6], 2640  }
   0xe   :  { %2072 = vsyncadd [#allocation6], 4294964656  ;;  %v75_v0 = vld [vmem:[#allocation5 + $0x78] sm:$0xff]  ;;  %v76_v1 = vld [vmem:[#allocation5 + $0x80] sm:$0xff]  ;;  %vm80_vm0 = vcmask 261120   ;;  %s2087_s0 = smov [#allocation8]  }
   0xf   :  { %v77_v2 = vld [vmem:[#allocation5 + $0x88] sm:$0xff]  ;;  %96 = vmatpush.msra.mxu0 %v75_v0  ;;  %116 = vmatpush.msra.mxu1 %v76_v1  ;;  %v78_v3 = vld [vmem:[#allocation5 + $0x90] sm:$0xff]  ;;  %v71_v5 = vld [vmem:[#allocation5 + $0x58] sm:$0xff]  ;;  %s1902_s2 = sshll.u32 %s2087_s0, 4  ;;  %s1904_s30 = sshll.u32 %s2763_s3, 4  ;;  %s1903_s2 = int_to_ptr.vmem [resolvable:$true] %s1902_s2  ;;  %s1905_s30 = int_to_ptr.hbm [resolvable:$true] %s1904_s30 }
  0x10   :  { %v70_v4 = vld [vmem:[#allocation5 + $0x50] sm:$0xff]  ;;  %136 = vmatpush.msra.mxu2 %v77_v2  ;;  %156 = vmatpush.msra.mxu3 %v78_v3  ;;  %v72_v6 = vld [vmem:[#allocation5 + $0x60] sm:$0xff]  ;;  %v73_v7 = vld [vmem:[#allocation5 + $0x68] sm:$0xff] }
  0x11   :  { %v65_v8 = vld [vmem:[#allocation5 + $0x28] sm:$0xff]  ;;  %97 = vmatpush.msra.mxu0 %v70_v4  ;;  %117 = vmatpush.msra.mxu1 %v71_v5  ;;  %v66_v9 = vld [vmem:[#allocation5 + $0x30] sm:$0xff]  ;;  %v67_v10 = vld [vmem:[#allocation5 + $0x38] sm:$0xff] }
  0x12   :  { %v68_v11 = vld [vmem:[#allocation5 + $0x40] sm:$0xff]  ;;  %137 = vmatpush.msra.mxu2 %v72_v6  ;;  %157 = vmatpush.msra.mxu3 %v73_v7  ;;  %v61_v13 = vld [vmem:[#allocation5 + $0x8] sm:$0xff]  ;;  %v62_v14 = vld [vmem:[#allocation5 + $0x10] sm:$0xff] }
  0x13   :  { %v60_v12 = vld [vmem:[#allocation5] sm:$0xff]  ;;  %98 = vmatpush.msra.mxu0 %v65_v8  ;;  %118 = vmatpush.msra.mxu1 %v66_v9  ;;  %v63_v15 = vld [vmem:[#allocation5 + $0x18] sm:$0xff]  ;;  %v74_v19 = vld [vmem:[#allocation5 + $0x70] sm:$0xff] }
  0x14   :  { %v58_v16 = vld [vmem:[#allocation2] sm:$0xff]  ;;  %138 = vmatpush.msra.mxu2 %v67_v10  ;;  %158 = vmatpush.msra.mxu3 %v68_v11  ;;  %v69_v20 = vld [vmem:[#allocation5 + $0x48] sm:$0xff]  ;;  %v64_v21 = vld [vmem:[#allocation5 + $0x20] sm:$0xff] }
  0x15   :  { %v59_v17 = vcvt.s32.f32 %v58_v16  ;;  %99 = vmatpush.msra.mxu0 %v60_v12  ;;  %119 = vmatpush.msra.mxu1 %v61_v13  ;;  %v79_v18 = vld [vmem:[#allocation5 + $0x98] sm:$0xff]  ;;  %v2122_v22 = vld [vmem:[#allocation7] sm:$0x1f] }
  0x16   :  { %139 = vmatpush.msra.mxu2 %v62_v14  ;;  %159 = vmatpush.msra.mxu3 %v63_v15  ;;  %v186_v23 = vperm.slane %v2122_v22, 0  ;;  %v187_v24 = vperm.slane %v2122_v22, 1  ;;  %v188_v29 = vperm.slane %v2122_v22, 2 }
  0x17   :  { %1915 = vmatmul.msk.f32.vlgmr.msra.gmra.mxu0 %vm80_vm0, %v59_v17  ;;  %1916 = vmatmul.msk.f32.vlgmr.msra.gmra.mxu1 %vm80_vm0, %v59_v17 }
  0x18   :  { %1917 = vmatmul.msk.f32.vlgmr.msra.gmra.mxu2 %vm80_vm0, %v59_v17  ;;  %1918 = vmatmul.msk.f32.vlgmr.msra.gmra.mxu3 %vm80_vm0, %v59_v17  ;;  %1963 = vrcp.f32 %v186_v23  ;;  %vm201_vm1 = vweird.f32 %v186_v23  ;;  %vm216_vm3 = vweird.f32 %v187_v24  ;;  %v207_v36 = vand.u32 2147483648, %v186_v23 }
  0x19   :  { %176 = vmatpush.msrb.mxu0 %v79_v18  ;;  %1965 = vrcp.f32 %v187_v24  ;;  %v222_v37 = vand.u32 2147483648, %v187_v24  ;;  %v205_v39 = vand.u32 2147483647, %v186_v23  ;;  %v220_v41 = vand.u32 2147483647, %v187_v24 }
  0x1a   :  { %1967 = vrcp.f32 %v188_v29  ;;  %v208_v43 = vor.u32 1.1754944e-38, %v207_v36  ;;  %vm231_vm9 = vweird.f32 %v188_v29  ;;  %v237_v52 = vand.u32 2147483648, %v188_v29 }
  0x1b   :  { %177 = vmatpush.msrb.mxu0 %v74_v19  ;;  %v223_v44 = vor.u32 1.1754944e-38, %v222_v37  ;;  %vm206_vm7 = vcmp.eq.f32.partialorder %v205_v39, 8.507059e+37  ;;  %vm221_vm8 = vcmp.eq.f32.partialorder %v220_v41, 8.507059e+37  ;;  %v235_v56 = vand.u32 2147483647, %v188_v29 }
  0x1c   :  { %v238_v62 = vor.u32 1.1754944e-38, %v237_v52  ;;  %v2084_v37 = vmov 920167782  }
  0x1d   :  { %178 = vmatpush.msrb.mxu0 %v69_v20  ;;  %vm236_vm12 = vcmp.eq.f32.partialorder %v235_v56, 8.507059e+37 }
  0x1e   :  { %v1964_v25 = vpop.eup %1963 }
  0x1f   :  { %179 = vmatpush.msrb.mxu0 %v64_v21  ;;  %v1966_v26 = vpop.eup %1965  ;;  %v197_v27 = vmul.f32 %v1964_v25, %v186_v23  ;;  %vm202_vm2 = vweird.f32 %v1964_v25 }
  0x20   :  { %1919 = vmatmul.msk.f32.vlgmr.msrb.gmra.mxu0 %vm80_vm0, %v59_v17  ;;  %v212_v28 = vmul.f32 %v1966_v26, %v187_v24  ;;  %v1968_v32 = vpop.eup %1967  ;;  %vm217_vm4 = vweird.f32 %v1966_v26  ;;  %vm203_vm5 = vmor %vm201_vm1, %vm202_vm2 }
  0x21   :  { %v198_v30 = vsub.f32 1.0, %v197_v27  ;;  %v227_v35 = vmul.f32 %v1968_v32, %v188_v29  ;;  %vm218_vm6 = vmor %vm216_vm3, %vm217_vm4  ;;  %vm232_vm10 = vweird.f32 %v1968_v32  ;;  %v2081_v27 = vmov 2475754826  }
  0x22   :  { %v213_v31 = vsub.f32 1.0, %v212_v28  ;;  %vm2131_vm11 = vmor %vm231_vm9, %vm232_vm10 }
  0x23   :  { %v199_v33 = vmul.f32 %v1964_v25, %v198_v30  ;;  %v228_v42 = vsub.f32 1.0, %v227_v35 }
  0x24   :  { %v214_v34 = vmul.f32 %v1966_v26, %v213_v31  ;;  %v2082_v31 = vmov 2131351028  }
  0x25   :  { %v200_v38 = vadd.f32 %v1964_v25, %v199_v33  ;;  %v229_v47 = vmul.f32 %v1968_v32, %v228_v42 }
  0x26   :  { %v215_v40 = vadd.f32 %v1966_v26, %v214_v34  ;;  %v2083_v34 = vmov 2102212464  }
  0x27   :  { %v204_v45 = vsel %vm203_vm5, %v1964_v25, %v200_v38  ;;  %v230_v55 = vadd.f32 %v1968_v32, %v229_v47  ;;  %v2080_v25 = vmov 683565275  }
  0x28   :  { %v219_v46 = vsel %vm218_vm6, %v1966_v26, %v215_v40  ;;  %v209_v48 = vsel %vm206_vm7, %v208_v43, %v204_v45  ;;  %v2085_v40 = vmov 1326507024  }
  0x29   :  { %v224_v49 = vsel %vm221_vm8, %v223_v44, %v219_v46  ;;  %v234_v1 = vsel %vm2131_vm11, %v1968_v32, %v230_v55 }
  0x2a   :  { %v239_v9 = vsel %vm236_vm12, %v238_v62, %v234_v1 }
  0x94   :  { %v101_v50 = vpop.f32.mrf.mxu0  ;;  %v121_v51 = vpop.f32.mrf.mxu1 }
  0x95   :  { %v2127_v53 = vmul.f32 %v209_v48, %v101_v50  ;;  %v2129_v54 = vmul.f32 %v224_v49, %v121_v51 }
  0x97   :  { %v342_v58 = vand.u32 2147483647, %v2127_v53  ;;  %v345_v59 = vand.u32 2139095040, %v2127_v53  ;;  %v496_v60 = vand.u32 2147483647, %v2129_v54  ;;  %v499_v61 = vand.u32 2139095040, %v2129_v54 }
  0x99   :  { %v346_v63 = vshrl.u32 %v345_v59, 23  ;;  %v349_v0 = vand.u32 8388607, %v342_v58  ;;  %v500_v2 = vshrl.u32 %v499_v61, 23  ;;  %v503_v3 = vand.u32 8388607, %v496_v60 }
  0x9b   :  { %v1920_v4 = vadd.s32 4294967169, %v346_v63  ;;  %v350_v5 = vor.u32 8388608, %v349_v0  ;;  %v1923_v6 = vadd.s32 4294967169, %v500_v2  ;;  %v504_v7 = vor.u32 8388608, %v503_v3  ;;  %v141_v8 = vpop.f32.mrf.mxu2 }
  0x9c   :  { %v2147_v13 = vmul.f32 %v239_v9, %v141_v8 }
  0x9d   :  { %v352_v10 = vadd.s32 1, %v1920_v4  ;;  %v2145_v11 = vshll.u32 %v350_v5, 8  ;;  %v506_v12 = vadd.s32 1, %v1923_v6  ;;  %v2149_v15 = vshll.u32 %v504_v7, 8 }
  0x9e   :  { %v653_v23 = vand.u32 2139095040, %v2147_v13 }
  0x9f   :  { %vm353_vm13 = vcmp.gt.s32.totalorder %v352_v10, 0  ;;  %vm507_vm14 = vcmp.gt.s32.totalorder %v506_v12, 0  ;;  %v2152_v18 = vand.u32 65535, %v2145_v11  ;;  %v2155_v20 = vshrl.u32 %v2145_v11, 16 }
  0xa0   :  { %v354_v14 = vsel %vm353_vm13, %v352_v10, 0  ;;  %v508_v17 = vsel %vm507_vm14, %v506_v12, 0  ;;  %v2165_v29 = vand.u32 65535, %v2149_v15 }
  0xa1   :  { %v356_v16 = vand.u32 31, %v354_v14  ;;  %v2157_v21 = vand.u32 31, %v508_v17  ;;  %v2160_v24 = vshrl.u32 %v354_v14, 5  ;;  %v2207_v8 = vshrl.u32 %v508_v17, 5 }
  0xa3   :  { %v357_v19 = vsub.s32 32, %v356_v16  ;;  %v359_v26 = vshll.u32 %v2080_v25, %v356_v16  ;;  %v362_v28 = vshll.u32 %v2081_v27, %v356_v16  ;;  %v365_v33 = vshll.u32 %v2082_v31, %v356_v16 }
  0xa4   :  { %v368_v36 = vshll.u32 %v2083_v34, %v356_v16  ;;  %v371_v39 = vshll.u32 %v2084_v37, %v356_v16  ;;  %v2176_v45 = vsub.s32 32, %v2157_v21  ;;  %vm374_vm15 = vcmp.lt.s32.totalorder %v2160_v24, 1 }
  0xa5   :  { %v360_v30 = vshrl.u32 %v2081_v27, %v357_v19  ;;  %v363_v32 = vshrl.u32 %v2082_v31, %v357_v19  ;;  %v366_v35 = vshrl.u32 %v2083_v34, %v357_v19  ;;  %v369_v38 = vshrl.u32 %v2084_v37, %v357_v19 }
  0xa6   :  { %v372_v41 = vshrl.u32 %v2085_v40, %v357_v19  ;;  %vm375_vm0 = vcmp.lt.s32.totalorder %v2160_v24, 2  ;;  %vm376_vm1 = vcmp.lt.s32.totalorder %v2160_v24, 3  ;;  %vm377_vm2 = vcmp.lt.s32.totalorder %v2160_v24, 4 }
  0xa7   :  { %v361_v42 = vor.u32 %v360_v30, %v359_v26  ;;  %v364_v43 = vor.u32 %v363_v32, %v362_v28  ;;  %v367_v44 = vor.u32 %v366_v35, %v365_v33  ;;  %v370_v46 = vor.u32 %v369_v38, %v368_v36 }
  0xa8   :  { %v373_v47 = vor.u32 %v372_v41, %v371_v39  ;;  %v513_v52 = vshll.u32 %v2080_v25, %v2157_v21  ;;  %v516_v55 = vshll.u32 %v2081_v27, %v2157_v21  ;;  %v514_v61 = vshrl.u32 %v2081_v27, %v2176_v45 }
  0xa9   :  { %v382_v48 = vsel %vm374_vm15, %v361_v42, %v364_v43  ;;  %v386_v49 = vsel %vm374_vm15, %v364_v43, %v367_v44  ;;  %v383_v50 = vsel %vm377_vm2, %v370_v46, 920167782  ;;  %v379_v56 = vsel %vm377_vm2, %v367_v44, 2102212464 }
  0xaa   :  { %v387_v51 = vsel %vm377_vm2, %v373_v47, 1326507024  ;;  %v384_v57 = vsel %vm376_vm1, %v367_v44, %v383_v50  ;;  %v358_v62 = vshrl.u32 %v2080_v25, %v357_v19  ;;  %v517_v1 = vshrl.u32 %v2082_v31, %v2176_v45 }
  0xab   :  { %v388_v59 = vsel %vm376_vm1, %v370_v46, %v387_v51  ;;  %v385_v63 = vsel %vm375_vm0, %v382_v48, %v384_v57  ;;  %v380_v7 = vsel %vm376_vm1, %v364_v43, %v379_v56  ;;  %v2209_v9 = vor.u32 %v514_v61, %v513_v52 }
  0xac   :  { %v389_v0 = vsel %vm375_vm0, %v386_v49, %v388_v59  ;;  %v415_v4 = vand.u32 65535, %v385_v63  ;;  %v416_v5 = vshrl.u32 %v385_v63, 16  ;;  %v378_v6 = vsel %vm374_vm15, %v358_v62, %v361_v42 }
  0xad   :  { %v393_v2 = vand.u32 65535, %v389_v0  ;;  %v394_v3 = vshrl.u32 %v389_v0, 16  ;;  %v2213_v14 = vor.u32 %v517_v1, %v516_v55  ;;  %v519_v16 = vshll.u32 %v2082_v31, %v2157_v21 }
  0xae   :  { %v418_v26 = vmul.u32 %v416_v5, %v2152_v18  ;;  %v419_v28 = vmul.u32 %v415_v4, %v2155_v20  ;;  %v520_v17 = vshrl.u32 %v2083_v34, %v2176_v45  ;;  %v417_v33 = vmul.u32 %v415_v4, %v2152_v18 }
  0xaf   :  { %v396_v10 = vmul.u32 %v394_v3, %v2152_v18  ;;  %v397_v12 = vmul.u32 %v393_v2, %v2155_v20  ;;  %v395_v19 = vmul.u32 %v393_v2, %v2152_v18  ;;  %v398_v30 = vmul.u32 %v394_v3, %v2155_v20 }
  0xb0   :  { %v420_v35 = vmul.u32 %v416_v5, %v2155_v20  ;;  %v421_v41 = vshll.u32 %v418_v26, 16  ;;  %v423_v43 = vshll.u32 %v419_v28, 16  ;;  %v522_v44 = vshll.u32 %v2083_v34, %v2157_v21 }
  0xb1   :  { %v399_v32 = vshll.u32 %v396_v10, 16  ;;  %v400_v36 = vshrl.u32 %v396_v10, 16  ;;  %v401_v38 = vshll.u32 %v397_v12, 16  ;;  %v402_v39 = vshrl.u32 %v397_v12, 16 }
  0xb2   :  { %v2086_v46 = vmov 0   ;;  %vm425_vm4 = vc.u32 %v417_v33, %v421_v41  ;;  %v427_v48 = vadd.s32 %v421_v41, %v417_v33  ;;  %v523_v18 = vshrl.u32 %v2084_v37, %v2176_v45 }
  0xb3   :  { %vm403_vm3 = vc.u32 %v395_v19, %v399_v32  ;;  %v405_v42 = vadd.s32 %v399_v32, %v395_v19  ;;  %v426_v20 = vsel %vm425_vm4, 1, %v2086_v46  ;;  %v525_v50 = vshll.u32 %v2084_v37, %v2157_v21 }
  0xb4   :  { %v404_v47 = vsel %vm403_vm3, 1, %v2086_v46  ;;  %v428_v52 = vadd.s32 %v426_v20, %v420_v35  ;;  %vm429_vm6 = vc.u32 %v427_v48, %v423_v43  ;;  %v2234_v55 = vor.u32 %v520_v17, %v519_v16 }
  0xb5   :  { %v406_v49 = vadd.s32 %v404_v47, %v398_v30  ;;  %vm407_vm5 = vc.u32 %v405_v42, %v401_v38  ;;  %v430_v57 = vsel %vm429_vm6, 1, %v2086_v46  ;;  %v524_v59 = vor.u32 %v523_v18, %v522_v44 }
  0xb6   :  { %v408_v51 = vsel %vm407_vm5, 1, %v2086_v46  ;;  %v526_v61 = vshrl.u32 %v2085_v40, %v2176_v45  ;;  %v422_v62 = vshrl.u32 %v418_v26, 16  ;;  %v432_v63 = vadd.s32 %v430_v57, %v428_v52 }
  0xb7   :  { %v410_v56 = vadd.s32 %v408_v51, %v406_v49  ;;  %vm528_vm7 = vcmp.lt.s32.totalorder %v2207_v8, 1  ;;  %vm530_vm8 = vcmp.lt.s32.totalorder %v2207_v8, 3  ;;  %vm529_vm9 = vcmp.lt.s32.totalorder %v2207_v8, 2 }
  0xb8   :  { %v527_v0 = vor.u32 %v526_v61, %v525_v50  ;;  %vm531_vm10 = vcmp.lt.s32.totalorder %v2207_v8, 4  ;;  %v424_v1 = vshrl.u32 %v419_v28, 16  ;;  %v433_v2 = vadd.s32 %v432_v63, %v422_v62 }
  0xb9   :  { %v411_v21 = vadd.s32 %v410_v56, %v400_v36  ;;  %v536_v3 = vsel %vm528_vm7, %v2209_v9, %v2213_v14  ;;  %v537_v4 = vsel %vm531_vm10, %v524_v59, 920167782  ;;  %v2251_v10 = vadd.s32 %v427_v48, %v423_v43 }
  0xba   :  { %v538_v12 = vsel %vm530_vm8, %v2234_v55, %v537_v4  ;;  %v540_v16 = vsel %vm528_vm7, %v2213_v14, %v2234_v55  ;;  %v381_v19 = vsel %vm375_vm0, %v378_v6, %v380_v7  ;;  %v434_v26 = vadd.s32 %v433_v2, %v424_v1 }
  0xbb   :  { %v2249_v5 = vadd.s32 %v411_v21, %v402_v39  ;;  %v539_v28 = vsel %vm529_vm9, %v536_v3, %v538_v12  ;;  %v541_v17 = vsel %vm531_vm10, %v527_v0, 1326507024  ;;  %v546_v32 = vshrl.u32 %v2149_v15, 16 }
  0xbc   :  { %v542_v30 = vsel %vm530_vm8, %v524_v59, %v541_v17  ;;  %v569_v33 = vand.u32 65535, %v539_v28  ;;  %v438_v35 = vadd.s32 1, %v434_v26  ;;  %v570_v6 = vshrl.u32 %v539_v28, 16 }
  0xbd   :  { %vm437_vm11 = vc.u32 %v2249_v5, %v2251_v10  ;;  %v543_v24 = vsel %vm529_vm9, %v540_v16, %v542_v30  ;;  %v654_v7 = vshrl.u32 %v653_v23, 23  ;;  %v435_v36 = vmul.u32 %v2145_v11, %v381_v19 }
  0xbe   :  { %v547_v38 = vand.u32 65535, %v543_v24  ;;  %v548_v39 = vshrl.u32 %v543_v24, 16  ;;  %v439_v41 = vsel %vm437_vm11, %v438_v35, %v434_v26  ;;  %v572_v42 = vmul.u32 %v570_v6, %v2165_v29 }
  0xbf   :  { %v573_v43 = vmul.u32 %v569_v33, %v546_v32  ;;  %v440_v44 = vadd.s32 %v439_v41, %v435_v36  ;;  %v571_v18 = vmul.u32 %v569_v33, %v2165_v29  ;;  %v574_v49 = vmul.u32 %v570_v6, %v546_v32 }
  0xc0   :  { %v550_v47 = vmul.u32 %v548_v39, %v2165_v29  ;;  %v551_v48 = vmul.u32 %v547_v38, %v546_v32  ;;  %v575_v20 = vshll.u32 %v572_v42, 16  ;;  %v1926_v50 = vadd.s32 4294967169, %v654_v7 }
  0xc1   :  { %v441_v51 = vadd.s32 536870912, %v440_v44  ;;  %v549_v23 = vmul.u32 %v547_v38, %v2165_v29  ;;  %v552_v52 = vmul.u32 %v548_v39, %v546_v32  ;;  %v577_v57 = vshll.u32 %v573_v43, 16 }
  0xc2   :  { %v553_v11 = vshll.u32 %v550_v47, 16  ;;  %v555_v56 = vshll.u32 %v551_v48, 16  ;;  %vm579_vm12 = vc.u32 %v571_v18, %v575_v20  ;;  %v581_v59 = vadd.s32 %v575_v20, %v571_v18 }
  0xc3   :  { %v442_v61 = vshrl.u32 %v441_v51, 30  ;;  %v580_v63 = vsel %vm579_vm12, 1, %v2086_v46  ;;  %v512_v21 = vshrl.u32 %v2080_v25, %v2176_v45  ;;  %v533_v3 = vsel %vm531_vm10, %v2234_v55, 2102212464 }
  0xc4   :  { %vm557_vm13 = vc.u32 %v549_v23, %v553_v11  ;;  %v559_v62 = vadd.s32 %v553_v11, %v549_v23  ;;  %v582_v1 = vadd.s32 %v580_v63, %v574_v49  ;;  %vm583_vm14 = vc.u32 %v581_v59, %v577_v57 }
  0xc5   :  { %v558_v0 = vsel %vm557_vm13, 1, %v2086_v46  ;;  %v443_v2 = vshll.u32 %v442_v61, 30  ;;  %v584_v12 = vsel %vm583_vm14, 1, %v2086_v46  ;;  %v660_v16 = vadd.s32 1, %v1926_v50 }
  0xc6   :  { %v560_v29 = vadd.s32 %v558_v0, %v552_v52  ;;  %vm561_vm15 = vc.u32 %v559_v62, %v555_v56  ;;  %v586_v28 = vadd.s32 %v584_v12, %v582_v1  ;;  %v650_v45 = vand.u32 2147483647, %v2147_v13 }
  0xc7   :  { %v562_v4 = vsel %vm561_vm15, 1, %v2086_v46  ;;  %v444_v19 = vsub.s32 %v440_v44, %v443_v2  ;;  %v532_v17 = vsel %vm528_vm7, %v512_v21, %v2209_v9  ;;  %v554_v30 = vshrl.u32 %v550_v47, 16 }
  0xc8   :  { %v564_v26 = vadd.s32 %v562_v4, %v560_v29  ;;  %v576_v32 = vshrl.u32 %v572_v42, 16  ;;  %vm661_vm0 = vcmp.gt.s32.totalorder %v660_v16, 0  ;;  %v534_v55 = vsel %vm530_vm8, %v2213_v14, %v533_v3 }
  0xc9   :  { %vm445_vm1 = vcmp.lt.s32.totalorder %v444_v19, 0  ;;  %v446_v33 = vsub.s32 0, %v444_v19  ;;  %v556_v35 = vshrl.u32 %v551_v48, 16  ;;  %v578_v6 = vshrl.u32 %v573_v43, 16 }
  0xca   :  { %v565_v24 = vadd.s32 %v564_v26, %v554_v30  ;;  %v587_v7 = vadd.s32 %v586_v28, %v576_v32  ;;  %v662_v36 = vsel %vm661_vm0, %v660_v16, 0  ;;  %v271_v38 = vlaneseq }
  0xcb   :  { %v447_v39 = vsel %vm445_vm1, %v446_v33, %v444_v19  ;;  %v657_v41 = vand.u32 8388607, %v650_v45  ;;  %v466_v44 = vsub.s32 4, %v442_v61  ;;  %v535_v18 = vsel %vm529_vm9, %v532_v17, %v534_v55 }
  0xcc   :  { %v448_v9 = vclz %v447_v39  ;;  %v2298_v42 = vadd.s32 %v565_v24, %v556_v35  ;;  %v588_v47 = vadd.s32 %v587_v7, %v578_v6  ;;  %v2302_v49 = vadd.s32 %v581_v59, %v577_v57 }
  0xcd   :  { %v664_v14 = vand.u32 31, %v662_v36  ;;  %vm344_vm2 = vcmp.lt.s32.totalorder %v2127_v53, 0  ;;  %v658_v20 = vor.u32 8388608, %v657_v41  ;;  %v2307_v50 = vand.u32 127, %v271_v38 }
  0xce   :  { %v1921_v48 = vadd.s32 4294967294, %v448_v9  ;;  %vm591_vm3 = vc.u32 %v2298_v42, %v2302_v49  ;;  %v592_v43 = vadd.s32 1, %v588_v47  ;;  %v467_v51 = vsel %vm344_vm2, %v466_v44, %v442_v61 }
  0xcf   :  { %v589_v8 = vmul.u32 %v2149_v15, %v535_v18  ;;  %vm2314_vm5 = vcmp.le.f32.partialorder %v342_v58, 0.7853982  ;;  %v665_v56 = vsub.s32 32, %v664_v14  ;;  %v436_v57 = vadd.s32 %v2251_v10, %v2249_v5 }
  0xd0   :  { %vm1922_vm4 = vcmp.lt.s32.totalorder %v1921_v48, 0  ;;  %v593_v11 = vsel %vm591_vm3, %v592_v43, %v588_v47  ;;  %v281_v21 = vand.u32 1, %v2307_v50  ;;  %v469_v15 = vsel %vm2314_vm5, 0, %v467_v51 }
  0xd1   :  { %v451_v52 = vsel %vm1922_vm4, 0, %v1921_v48  ;;  %v594_v63 = vadd.s32 %v593_v11, %v589_v8  ;;  %v667_v61 = vshll.u32 %v2080_v25, %v664_v14  ;;  %v2324_v58 = vshll.u32 %v658_v20, 8 }
  0xd2   :  { %v452_v59 = vsub.s32 32, %v451_v52  ;;  %v456_v62 = vsub.s32 4294967266, %v451_v52  ;;  %v453_v0 = vshll.u32 %v444_v19, %v451_v52  ;;  %v670_v3 = vshll.u32 %v2081_v27, %v664_v14 }
  0xd3   :  { %v595_v29 = vadd.s32 536870912, %v594_v63  ;;  %v673_v5 = vshll.u32 %v2082_v31, %v664_v14  ;;  %v676_v10 = vshll.u32 %v2083_v34, %v664_v14  ;;  %v677_v4 = vshrl.u32 %v2084_v37, %v665_v56 }
  0xd4   :  { %v454_v1 = vshrl.u32 %v436_v57, %v452_v59  ;;  %v457_v2 = vadd.s32 127, %v456_v62  ;;  %v668_v28 = vshrl.u32 %v2081_v27, %v665_v56  ;;  %v671_v17 = vshrl.u32 %v2082_v31, %v665_v56 }
  0xd5   :  { %v596_v26 = vshrl.u32 %v595_v29, 30  ;;  %v674_v19 = vshrl.u32 %v2083_v34, %v665_v56  ;;  %v679_v30 = vshll.u32 %v2084_v37, %v664_v14  ;;  %v680_v32 = vshrl.u32 %v2085_v40, %v665_v56 }
  0xd6   :  { %v455_v12 = vor.u32 %v454_v1, %v453_v0  ;;  %v458_v16 = vshll.u32 %v457_v2, 23  ;;  %vm498_vm6 = vcmp.lt.s32.totalorder %v2129_v54, 0  ;;  %v2336_v35 = vshrl.u32 %v662_v36, 5 }
  0xd7   :  { %v597_v55 = vshll.u32 %v596_v26, 30  ;;  %v2338_v24 = vand.u32 3, %v469_v15  ;;  %v1256_v6 = vadd.s32 3, %v469_v15  ;;  %v678_v7 = vor.u32 %v677_v4, %v676_v10 }
  0xd8   :  { %v459_v33 = vor.u32 4788187, %v458_v16  ;;  %v2341_v38 = vand.u32 65535, %v2324_v58  ;;  %v462_v41 = vcvt.s32.f32 %v455_v12  ;;  %vm2345_vm7 = vcmp.le.f32.partialorder %v496_v60, 0.7853982 }
  0xd9   :  { %v598_v44 = vsub.s32 %v594_v63, %v597_v55  ;;  %v669_v47 = vor.u32 %v668_v28, %v667_v61  ;;  %v620_v18 = vsub.s32 4, %v596_v26  ;;  %v2349_v36 = vor.u32 %v671_v17, %v670_v3 }
  0xda   :  { %v460_v39 = vand.u32 2147483647, %v459_v33  ;;  %v675_v14 = vor.u32 %v674_v19, %v673_v5  ;;  %v681_v48 = vor.u32 %v680_v32, %v679_v30  ;;  %vm685_vm9 = vcmp.lt.s32.totalorder %v2336_v35, 4 }
  0xdb   :  { %vm599_vm8 = vcmp.lt.s32.totalorder %v598_v44, 0  ;;  %v600_v20 = vsub.s32 0, %v598_v44  ;;  %v2352_v51 = vand.u32 3, %v1256_v6  ;;  %v691_v60 = vsel %vm685_vm9, %v678_v7, 920167782 }
  0xdc   :  { %v463_v43 = vmul.f32 %v462_v41, %v460_v39  ;;  %v2357_v8 = vshrl.u32 %v2324_v58, 16  ;;  %v2360_v52 = vperm.slane %v2122_v22, 3  ;;  %v666_v59 = vshrl.u32 %v2080_v25, %v665_v56 }
  0xdd   :  { %v601_v57 = vsel %vm599_vm8, %v600_v20, %v598_v44  ;;  %vm682_vm10 = vcmp.lt.s32.totalorder %v2336_v35, 1  ;;  %v621_v63 = vsel %vm498_vm6, %v620_v18, %v596_v26  ;;  %vm684_vm11 = vcmp.lt.s32.totalorder %v2336_v35, 3 }
  0xde   :  { %v464_v11 = vxor.u32 2147483648, %v463_v43  ;;  %v602_v62 = vclz %v601_v57  ;;  %v690_v15 = vsel %vm682_vm10, %v669_v47, %v2349_v36  ;;  %v692_v0 = vsel %vm684_vm11, %v675_v14, %v691_v60 }
  0xdf   :  { %v694_v1 = vsel %vm682_vm10, %v2349_v36, %v675_v14  ;;  %v695_v56 = vsel %vm685_vm9, %v681_v48, 1326507024  ;;  %v2381_v29 = vadd.s32 128, %v2307_v50  ;;  %v590_v3 = vadd.s32 %v2302_v49, %v2298_v42 }
  0xe0   :  { %v465_v61 = vsel %vm344_vm2, %v464_v11, %v463_v43  ;;  %v1924_v5 = vadd.s32 4294967294, %v602_v62  ;;  %vm683_vm12 = vcmp.lt.s32.totalorder %v2336_v35, 2  ;;  %v2388_v4 = vsel %vm682_vm10, %v666_v59, %v669_v47 }
  0xe1   :  { %v2378_v2 = vsel %vm2314_vm5, %v2127_v53, %v465_v61  ;;  %v696_v12 = vsel %vm684_vm11, %v678_v7, %v695_v56  ;;  %v2394_v23 = vsel %vm2345_vm7, 0, %v621_v63  ;;  %v2398_v16 = vsel %vm683_vm12, %v690_v15, %v692_v0 }
  0xe2   :  { %v470_v10 = vmul.f32 %v2378_v2, %v2378_v2  ;;  %vm1925_vm13 = vcmp.lt.s32.totalorder %v1924_v5, 0  ;;  %v697_v42 = vsel %vm683_vm12, %v694_v1, %v696_v12  ;;  %v687_v32 = vsel %vm685_vm9, %v675_v14, 2102212464 }
  0xe3   :  { %v605_v28 = vsel %vm1925_vm13, 0, %v1924_v5  ;;  %v701_v17 = vand.u32 65535, %v697_v42  ;;  %v702_v33 = vshrl.u32 %v697_v42, 16  ;;  %v724_v39 = vshrl.u32 %v2398_v16, 16 }
  0xe4   :  { %v471_v49 = vmul.f32 -0.001358992, %v470_v10  ;;  %v478_v26 = vmul.f32 -0.00019511016, %v470_v10  ;;  %v606_v19 = vsub.s32 32, %v605_v28  ;;  %v610_v30 = vsub.s32 4294967266, %v605_v28 }
  0xe5   :  { %v607_v7 = vshll.u32 %v598_v44, %v605_v28  ;;  %v704_v18 = vmul.u32 %v702_v33, %v2341_v38  ;;  %v2407_v48 = vmul.u32 %v701_v17, %v2357_v8  ;;  %v2410_v60 = vadd.s32 3, %v2394_v23 }
  0xe6   :  { %v472_v55 = vadd.f32 0.041655596, %v471_v49  ;;  %v479_v6 = vadd.f32 0.008332121, %v478_v26  ;;  %v608_v41 = vshrl.u32 %v590_v3, %v606_v19  ;;  %v611_v47 = vadd.s32 127, %v610_v30 }
  0xe7   :  { %v723_v14 = vand.u32 65535, %v2398_v16  ;;  %vm491_vm14 = vcmp.eq.s32.totalorder %v2338_v24, 2  ;;  %vm1262_vm15 = vcmp.eq.s32.totalorder %v2352_v51, 2  ;;  %v703_v57 = vmul.u32 %v701_v17, %v2341_v38 }
  0xe8   :  { %v473_v43 = vmul.f32 %v472_v55, %v470_v10  ;;  %v480_v20 = vmul.f32 %v479_v6, %v470_v10  ;;  %v609_v44 = vor.u32 %v608_v41, %v607_v7  ;;  %v612_v11 = vshll.u32 %v611_v47, 23 }
  0xe9   :  { %v707_v59 = vshll.u32 %v704_v18, 16  ;;  %v706_v15 = vmul.u32 %v702_v33, %v2357_v8  ;;  %1969 = vrcp.f32 %v2360_v52  ;;  %vm488_vm0 = vcmp.eq.s32.totalorder %v2338_v24, 0 }
  0xea   :  { %v474_v62 = vadd.f32 -0.4999988, %v473_v43  ;;  %v481_v63 = vadd.f32 -0.16666654, %v480_v20  ;;  %vm1259_vm1 = vcmp.eq.s32.totalorder %v2352_v51, 0  ;;  %v709_v0 = vshll.u32 %v2407_v48, 16 }
  0xeb   :  { %v613_v61 = vor.u32 4788187, %v612_v11  ;;  %vm711_vm2 = vc.u32 %v703_v57, %v707_v59  ;;  %v2422_v1 = vmul.u32 %v724_v39, %v2341_v38  ;;  %vm2426_vm3 = vcmp.eq.s32.totalorder %v281_v21, 1 }
  0xec   :  { %v475_v3 = vmul.f32 %v474_v62, %v470_v10  ;;  %v482_v5 = vmul.f32 %v481_v63, %v470_v10  ;;  %vm487_vm4 = vcmp.lt.s32.totalorder %v2338_v24, 2  ;;  %vm1258_vm5 = vcmp.lt.s32.totalorder %v2352_v51, 2 }
  0xed   :  { %v712_v12 = vsel %vm711_vm2, 1, %v2086_v46  ;;  %v713_v16 = vadd.s32 %v707_v59, %v703_v57  ;;  %vm485_vm8 = vweird.f32 %v2127_v53  ;;  %v614_v42 = vand.u32 2147483647, %v613_v61 }
  0xee   :  { %v616_v49 = vcvt.s32.f32 %v609_v44  ;;  %v688_v21 = vsel %vm684_vm11, %v2349_v36, %v687_v32  ;;  %v714_v26 = vadd.s32 %v712_v12, %v706_v15  ;;  %v476_v28 = vadd.f32 1.0, %v475_v3 }
  0xef   :  { %v483_v17 = vadd.f32 1.0, %v482_v5  ;;  %vm715_vm9 = vc.u32 %v713_v16, %v709_v0  ;;  %v727_v10 = vmul.u32 %v723_v14, %v2357_v8  ;;  %v725_v33 = vmul.u32 %v723_v14, %v2341_v38  ;;  %v2441_v6 = vpop.eup %1969 }
  0xf0   :  { %v617_v19 = vmul.f32 %v616_v49, %v614_v42  ;;  %v716_v30 = vsel %vm715_vm9, 1, %v2086_v46  ;;  %v729_v55 = vshll.u32 %v2422_v1, 16  ;;  %v492_v41 = vxor.u32 2147483648, %v476_v28 }
  0xf1   :  { %v484_v7 = vmul.f32 %v483_v17, %v2378_v2  ;;  %v710_v36 = vshrl.u32 %v2407_v48, 16  ;;  %v718_v32 = vadd.s32 %v716_v30, %v714_v26  ;;  %v708_v43 = vshrl.u32 %v704_v18, 16 }
  0xf2   :  { %v618_v47 = vxor.u32 2147483648, %v617_v19  ;;  %v728_v20 = vmul.u32 %v724_v39, %v2357_v8  ;;  %vm733_vm10 = vc.u32 %v725_v33, %v729_v55  ;;  %v731_v14 = vshll.u32 %v727_v10, 16 }
  0xf3   :  { %v489_v44 = vxor.u32 2147483648, %v484_v7  ;;  %v493_v11 = vsel %vm491_vm14, %v492_v41, %v484_v7  ;;  %v1264_v38 = vsel %vm1262_vm15, %v492_v41, %v484_v7  ;;  %v719_v57 = vadd.s32 %v718_v32, %v708_v43 }
  0xf4   :  { %v619_v2 = vsel %vm498_vm6, %v618_v47, %v617_v19  ;;  %v734_v48 = vsel %vm733_vm10, 1, %v2086_v46  ;;  %v735_v59 = vadd.s32 %v729_v55, %v725_v33  ;;  %v242_v62 = vmul.f32 %v2441_v6, %v2360_v52 }
  0xf5   :  { %v490_v18 = vsel %vm488_vm0, %v476_v28, %v489_v44  ;;  %v1261_v8 = vsel %vm1259_vm1, %v476_v28, %v489_v44  ;;  %v622_v39 = vsel %vm2345_vm7, %v2129_v54, %v619_v2  ;;  %v736_v0 = vadd.s32 %v734_v48, %v728_v20 }
  0xf6   :  { %v494_v63 = vsel %vm487_vm4, %v490_v18, %v493_v11  ;;  %v1265_v15 = vsel %vm1258_vm5, %v1261_v8, %v1264_v38  ;;  %v624_v61 = vmul.f32 %v622_v39, %v622_v39  ;;  %v730_v9 = vshrl.u32 %v2422_v1, 16 }
  0xf7   :  { %v495_v3 = vsel %vm485_vm8, nan, %v494_v63  ;;  %v1266_v5 = vsel %vm485_vm8, nan, %v1265_v15  ;;  %vm737_vm6 = vc.u32 %v735_v59, %v731_v14  ;;  %v2474_v51 = vadd.s32 %v719_v57, %v710_v36 }
  0xf8   :  { %v1887_v12 = vsel %vm2426_vm3, %v495_v3, %v1266_v5  ;;  %v625_v16 = vmul.f32 -0.001358992, %v624_v61  ;;  %v632_v24 = vmul.f32 -0.00019511016, %v624_v61  ;;  %v738_v42 = vsel %vm737_vm6, 1, %v2086_v46 }
  0xf9   :  { %1892 = vst [vmem:[#allocation8] sm:$0xff] %v1887_v12  ;;  %v732_v49 = vshrl.u32 %v727_v10, 16  ;;  %v740_v26 = vadd.s32 %v738_v42, %v736_v0  ;;  %v243_v28 = vsub.f32 1.0, %v242_v62  ;;  %vm246_vm7 = vweird.f32 %v2360_v52 }
  0xfa   :  { %v626_v17 = vadd.f32 0.041655596, %v625_v16  ;;  %v633_v19 = vadd.f32 0.008332121, %v632_v24  ;;  %vm247_vm11 = vweird.f32 %v2441_v6  ;;  %v250_v56 = vand.u32 2147483647, %v2360_v52 }
  0xfb   :  { %v741_v53 = vadd.s32 %v740_v26, %v730_v9  ;;  %v244_v1 = vmul.f32 %v2441_v6, %v243_v28  ;;  %v252_v30 = vand.u32 2147483648, %v2360_v52  ;;  %v689_v10 = vsel %vm683_vm12, %v2388_v4, %v688_v21  ;;  %vm2486_vm13 = vmor %vm246_vm7, %vm247_vm11  ;;  %v161_v52 = vpop.f32.mrf.mxu3 }
  0xfc   :  { %v627_v33 = vmul.f32 %v626_v17, %v624_v61  ;;  %v634_v55 = vmul.f32 %v633_v19, %v624_v61  ;;  %v2484_v7 = vadd.s32 %v735_v59, %v731_v14  ;;  %vm251_vm14 = vcmp.eq.f32.partialorder %v250_v56, 8.507059e+37 }
  0xfd   :  { %v742_v36 = vadd.s32 %v741_v53, %v732_v49  ;;  %v245_v32 = vadd.f32 %v2441_v6, %v244_v1  ;;  %v253_v47 = vor.u32 1.1754944e-38, %v252_v30  ;;  %v2494_v35 = vperm.slane %v2122_v22, 4 }
  0xfe   :  { %v628_v43 = vadd.f32 -0.4999988, %v627_v33  ;;  %v635_v20 = vadd.f32 -0.16666654, %v634_v55  ;;  %vm745_vm15 = vc.u32 %v2474_v51, %v2484_v7  ;;  %v288_v4 = vand.u32 1, %v2381_v29 }
  0xff   :  { %v746_v21 = vadd.s32 1, %v742_v36  ;;  %v249_v44 = vsel %vm2486_vm13, %v2441_v6, %v245_v32  ;;  %v743_v14 = vmul.u32 %v2324_v58, %v689_v10  ;;  %v640_v57 = vand.u32 3, %v2394_v23 }
 0x100   :  { %v629_v11 = vmul.f32 %v628_v43, %v624_v61  ;;  %v636_v38 = vmul.f32 %v635_v20, %v624_v61  ;;  %v254_v2 = vsel %vm251_vm14, %v253_v47, %v249_v44  ;;  %v1412_v48 = vand.u32 3, %v2410_v60 }
 0x101   :  { %v747_v59 = vsel %vm745_vm15, %v746_v21, %v742_v36  ;;  %v2503_v18 = vmul.f32 %v254_v2, %v161_v52  ;;  %1971 = vrcp.f32 %v2494_v35  ;;  %vm639_vm12 = vweird.f32 %v2129_v54 }
 0x102   :  { %v630_v22 = vadd.f32 1.0, %v629_v11  ;;  %v637_v8 = vadd.f32 1.0, %v636_v38  ;;  %v748_v29 = vadd.s32 %v747_v59, %v743_v14  ;;  %vm2508_vm0 = vcmp.eq.s32.totalorder %v288_v4, 1 }
 0x103   :  { %v807_v62 = vand.u32 2139095040, %v2503_v18  ;;  %vm641_vm1 = vcmp.lt.s32.totalorder %v640_v57, 2  ;;  %vm642_vm2 = vcmp.eq.s32.totalorder %v640_v57, 0  ;;  %vm645_vm3 = vcmp.eq.s32.totalorder %v640_v57, 2 }
 0x104   :  { %v638_v6 = vmul.f32 %v637_v8, %v622_v39  ;;  %v646_v63 = vxor.u32 2147483648, %v630_v22  ;;  %v749_v58 = vadd.s32 536870912, %v748_v29  ;;  %vm1413_vm4 = vcmp.lt.s32.totalorder %v1412_v48, 2 }
 0x105   :  { %v808_v23 = vshrl.u32 %v807_v62, 23  ;;  %vm1414_vm5 = vcmp.eq.s32.totalorder %v1412_v48, 0  ;;  %vm1417_vm8 = vcmp.eq.s32.totalorder %v1412_v48, 2  ;;  %v804_v49 = vand.u32 2147483647, %v2503_v18 }
 0x106   :  { %v643_v60 = vxor.u32 2147483648, %v638_v6  ;;  %v2512_v61 = vshrl.u32 %v749_v58, 30  ;;  %v647_v0 = vsel %vm645_vm3, %v646_v63, %v638_v6  ;;  %v1419_v12 = vsel %vm1417_vm8, %v646_v63, %v638_v6 }
 0x107   :  { %v1929_v39 = vadd.s32 4294967169, %v808_v23  ;;  %v2514_v3 = vpop.eup %1971  ;;  %v811_v30 = vand.u32 8388607, %v804_v49  ;;  %v2530_v36 = vadd.s32 256, %v2307_v50  ;;  %v744_v32 = vadd.s32 %v2484_v7, %v2474_v51 }
 0x108   :  { %v644_v5 = vsel %vm642_vm2, %v630_v22, %v643_v60  ;;  %v1416_v9 = vsel %vm1414_vm5, %v630_v22, %v643_v60  ;;  %v751_v16 = vshll.u32 %v2512_v61, 30  ;;  %v257_v1 = vmul.f32 %v2514_v3, %v2494_v35 }
 0x109   :  { %v648_v24 = vsel %vm641_vm1, %v644_v5, %v647_v0  ;;  %v1420_v42 = vsel %vm1413_vm4, %v1416_v9, %v1419_v12  ;;  %v814_v26 = vadd.s32 1, %v1929_v39  ;;  %vm652_vm6 = vcmp.lt.s32.totalorder %v2147_v13, 0 }
 0x10a   :  { %v649_v28 = vsel %vm639_vm12, nan, %v648_v24  ;;  %v1421_v17 = vsel %vm639_vm12, nan, %v1420_v42  ;;  %v752_v19 = vsub.s32 %v748_v29, %v751_v16  ;;  %v258_v54 = vsub.f32 1.0, %v257_v1 }
 0x10b   :  { %v1888_v53 = vsel %vm2508_vm0, %v649_v28, %v1421_v17  ;;  %vm815_vm9 = vcmp.gt.s32.totalorder %v814_v26, 0  ;;  %v812_v43 = vor.u32 8388608, %v811_v30  ;;  %vm261_vm7 = vweird.f32 %v2494_v35 }
 0x10c   :  { %1893 = vst [vmem:[#allocation8 + $0x8] sm:$0xff] %v1888_v53  ;;  %vm753_vm10 = vcmp.lt.s32.totalorder %v752_v19, 0  ;;  %v754_v56 = vsub.s32 0, %v752_v19  ;;  %v816_v33 = vsel %vm815_vm9, %v814_v26, 0  ;;  %v265_v20 = vand.u32 2147483647, %v2494_v35 }
 0x10d   :  { %v818_v41 = vand.u32 31, %v816_v33  ;;  %v267_v52 = vand.u32 2147483648, %v2494_v35  ;;  %v774_v4 = vsub.s32 4, %v2512_v61  ;;  %v259_v38 = vmul.f32 %v2514_v3, %v258_v54 }
 0x10e   :  { %v755_v55 = vsel %vm753_vm10, %v754_v56, %v752_v19  ;;  %v2547_v8 = vshrl.u32 %v816_v33, 5  ;;  %vm2558_vm13 = vcmp.le.f32.partialorder %v650_v45, 0.7853982  ;;  %vm2562_vm14 = vcmp.eq.f32.partialorder %v265_v20, 8.507059e+37 }
 0x10f   :  { %v756_v10 = vclz %v755_v55  ;;  %v819_v21 = vsub.s32 32, %v818_v41  ;;  %v821_v44 = vshll.u32 %v2080_v25, %v818_v41  ;;  %v824_v11 = vshll.u32 %v2081_v27, %v818_v41 }
 0x110   :  { %v827_v51 = vshll.u32 %v2082_v31, %v818_v41  ;;  %v830_v7 = vshll.u32 %v2083_v34, %v818_v41  ;;  %v833_v48 = vshll.u32 %v2084_v37, %v818_v41  ;;  %v2566_v16 = vshll.u32 %v812_v43, 8 }
 0x111   :  { %v1927_v47 = vadd.s32 4294967294, %v756_v10  ;;  %v822_v2 = vshrl.u32 %v2081_v27, %v819_v21  ;;  %v825_v57 = vshrl.u32 %v2082_v31, %v819_v21  ;;  %v828_v29 = vshrl.u32 %v2083_v34, %v819_v21 }
 0x112   :  { %v831_v63 = vshrl.u32 %v2084_v37, %v819_v21  ;;  %v834_v58 = vshrl.u32 %v2085_v40, %v819_v21  ;;  %vm262_vm15 = vweird.f32 %v2514_v3  ;;  %vm836_vm12 = vcmp.lt.s32.totalorder %v2547_v8, 1 }
 0x113   :  { %vm1928_vm11 = vcmp.lt.s32.totalorder %v1927_v47, 0  ;;  %v2550_v62 = vor.u32 %v822_v2, %v821_v44  ;;  %v2552_v6 = vor.u32 %v825_v57, %v824_v11  ;;  %v829_v39 = vor.u32 %v828_v29, %v827_v51  ;;  %vm2595_vm3 = vmor %vm261_vm7, %vm262_vm15 }
 0x114   :  { %v759_v14 = vsel %vm1928_vm11, 0, %v1927_v47  ;;  %v832_v9 = vor.u32 %v831_v63, %v830_v7  ;;  %v835_v12 = vor.u32 %v834_v58, %v833_v48  ;;  %vm839_vm0 = vcmp.lt.s32.totalorder %v2547_v8, 4 }
 0x115   :  { %v760_v59 = vsub.s32 32, %v759_v14  ;;  %v764_v22 = vsub.s32 4294967266, %v759_v14  ;;  %v761_v23 = vshll.u32 %v752_v19, %v759_v14  ;;  %v775_v45 = vsel %vm652_vm6, %v774_v4, %v2512_v61 }
 0x116   :  { %v844_v26 = vsel %vm836_vm12, %v2550_v62, %v2552_v6  ;;  %v845_v28 = vsel %vm839_vm0, %v832_v9, 920167782  ;;  %v268_v17 = vor.u32 1.1754944e-38, %v267_v52  ;;  %vm838_vm1 = vcmp.lt.s32.totalorder %v2547_v8, 3 }
 0x117   :  { %v762_v60 = vshrl.u32 %v744_v32, %v760_v59  ;;  %v765_v0 = vadd.s32 127, %v764_v22  ;;  %v848_v53 = vsel %vm836_vm12, %v2552_v6, %v829_v39  ;;  %v260_v1 = vadd.f32 %v2514_v3, %v259_v38 }
 0x118   :  { %vm837_vm2 = vcmp.lt.s32.totalorder %v2547_v8, 2  ;;  %v846_v61 = vsel %vm838_vm1, %v829_v39, %v845_v28  ;;  %v849_v56 = vsel %vm839_vm0, %v835_v12, 1326507024  ;;  %v853_v30 = vand.u32 65535, %v2566_v16 }
 0x119   :  { %v763_v24 = vor.u32 %v762_v60, %v761_v23  ;;  %v766_v42 = vshll.u32 %v765_v0, 23  ;;  %v847_v41 = vsel %vm837_vm2, %v844_v26, %v846_v61  ;;  %v850_v54 = vsel %vm838_vm1, %v832_v9, %v849_v56  ;;  %v181_v60 = vpop.f32.mrf.mxu0 }
 0x11a   :  { %v851_v32 = vsel %vm837_vm2, %v848_v53, %v850_v54  ;;  %v854_v47 = vshrl.u32 %v2566_v16, 16  ;;  %v877_v43 = vand.u32 65535, %v847_v41  ;;  %v878_v20 = vshrl.u32 %v847_v41, 16 }
 0x11b   :  { %v767_v19 = vor.u32 4788187, %v766_v42  ;;  %v770_v10 = vcvt.s32.f32 %v763_v24  ;;  %v855_v52 = vand.u32 65535, %v851_v32  ;;  %v856_v4 = vshrl.u32 %v851_v32, 16 }
 0x11c   :  { %v264_v44 = vsel %vm2595_vm3, %v2514_v3, %v260_v1  ;;  %v2611_v11 = vsel %vm2558_vm13, 0, %v775_v45  ;;  %v820_v51 = vshrl.u32 %v2080_v25, %v819_v21  ;;  %v880_v7 = vmul.u32 %v878_v20, %v853_v30 }
 0x11d   :  { %v768_v55 = vand.u32 2147483647, %v767_v19  ;;  %v881_v38 = vmul.u32 %v877_v43, %v854_v47  ;;  %v841_v2 = vsel %vm839_vm0, %v829_v39, 2102212464  ;;  %v858_v57 = vmul.u32 %v856_v4, %v853_v30 }
 0x11e   :  { %v859_v48 = vmul.u32 %v855_v52, %v854_v47  ;;  %v879_v59 = vmul.u32 %v877_v43, %v853_v30  ;;  %v882_v22 = vmul.u32 %v878_v20, %v854_v47  ;;  %v883_v29 = vshll.u32 %v880_v7, 16 }
 0x11f   :  { %v771_v35 = vmul.f32 %v770_v10, %v768_v55  ;;  %v269_v3 = vsel %vm2562_vm14, %v268_v17, %v264_v44  ;;  %v857_v58 = vmul.u32 %v855_v52, %v853_v30  ;;  %v860_v23 = vmul.u32 %v856_v4, %v854_v47 }
 0x120   :  { %v861_v21 = vshll.u32 %v858_v57, 16  ;;  %v863_v39 = vshll.u32 %v859_v48, 16  ;;  %v885_v9 = vshll.u32 %v881_v38, 16  ;;  %vm887_vm4 = vc.u32 %v879_v59, %v883_v29 }
 0x121   :  { %v772_v14 = vxor.u32 2147483648, %v771_v35  ;;  %v888_v5 = vsel %vm887_vm4, 1, %v2086_v46  ;;  %v889_v45 = vadd.s32 %v883_v29, %v879_v59  ;;  %v2625_v28 = vmul.f32 %v269_v3, %v181_v60 }
 0x122   :  { %vm865_vm5 = vc.u32 %v857_v58, %v861_v21  ;;  %v867_v24 = vadd.s32 %v861_v21, %v857_v58  ;;  %v890_v26 = vadd.s32 %v888_v5, %v882_v22  ;;  %v840_v15 = vsel %vm836_vm12, %v820_v51, %v2550_v62 }
 0x123   :  { %v773_v63 = vsel %vm652_vm6, %v772_v14, %v771_v35  ;;  %v866_v42 = vsel %vm865_vm5, 1, %v2086_v46  ;;  %v862_v1 = vshrl.u32 %v858_v57, 16  ;;  %vm891_vm9 = vc.u32 %v889_v45, %v885_v9 }
 0x124   :  { %v776_v0 = vsel %vm2558_vm13, %v2147_v13, %v773_v63  ;;  %v868_v53 = vadd.s32 %v866_v42, %v860_v23  ;;  %vm869_vm8 = vc.u32 %v867_v24, %v863_v39  ;;  %v892_v55 = vsel %vm891_vm9, 1, %v2086_v46 }
 0x125   :  { %v778_v12 = vmul.f32 %v776_v0, %v776_v0  ;;  %v870_v61 = vsel %vm869_vm8, 1, %v2086_v46  ;;  %v842_v10 = vsel %vm838_vm1, %v2552_v6, %v841_v2  ;;  %v884_v41 = vshrl.u32 %v880_v7, 16 }
 0x126   :  { %v872_v33 = vadd.s32 %v870_v61, %v868_v53  ;;  %v894_v54 = vadd.s32 %v892_v55, %v890_v26  ;;  %v961_v32 = vand.u32 2139095040, %v2625_v28  ;;  %v864_v62 = vshrl.u32 %v859_v48, 16 }
 0x127   :  { %v779_v17 = vmul.f32 -0.001358992, %v778_v12  ;;  %v786_v19 = vmul.f32 -0.00019511016, %v778_v12  ;;  %v1566_v35 = vadd.s32 3, %v2611_v11  ;;  %v886_v52 = vshrl.u32 %v881_v38, 16 }
 0x128   :  { %v873_v20 = vadd.s32 %v872_v33, %v862_v1  ;;  %v895_v4 = vadd.s32 %v894_v54, %v884_v41  ;;  %v962_v44 = vshrl.u32 %v961_v32, 23  ;;  %v2639_v59 = vadd.s32 %v889_v45, %v885_v9 }
 0x129   :  { %v780_v56 = vadd.f32 0.041655596, %v779_v17  ;;  %v787_v30 = vadd.f32 0.008332121, %v786_v19  ;;  %v295_v6 = vand.u32 1, %v2530_v36  ;;  %v843_v7 = vsel %vm837_vm2, %v840_v15, %v842_v10 }
 0x12a   :  { %v2637_v57 = vadd.s32 %v873_v20, %v864_v62  ;;  %v896_v2 = vadd.s32 %v895_v4, %v886_v52  ;;  %v1932_v22 = vadd.s32 4294967169, %v962_v44  ;;  %v794_v38 = vand.u32 3, %v2611_v11 }
 0x12b   :  { %v781_v47 = vmul.f32 %v780_v56, %v778_v12  ;;  %v788_v43 = vmul.f32 %v787_v30, %v778_v12  ;;  %v1567_v3 = vand.u32 3, %v1566_v35  ;;  %v897_v60 = vmul.u32 %v2566_v16, %v843_v7 }
 0x12c   :  { %vm899_vm10 = vc.u32 %v2637_v57, %v2639_v59  ;;  %v900_v63 = vadd.s32 1, %v896_v2  ;;  %v968_v58 = vadd.s32 1, %v1932_v22  ;;  %v958_v36 = vand.u32 2147483647, %v2625_v28 }
 0x12d   :  { %v782_v51 = vadd.f32 -0.4999988, %v781_v47  ;;  %v789_v14 = vadd.f32 -0.16666654, %v788_v43  ;;  %vm2649_vm6 = vcmp.eq.s32.totalorder %v295_v6, 1  ;;  %vm795_vm11 = vcmp.lt.s32.totalorder %v794_v38, 2 }
 0x12e   :  { %v901_v39 = vsel %vm899_vm10, %v900_v63, %v896_v2  ;;  %vm969_vm7 = vcmp.gt.s32.totalorder %v968_v58, 0  ;;  %vm796_vm13 = vcmp.eq.s32.totalorder %v794_v38, 0  ;;  %vm799_vm14 = vcmp.eq.s32.totalorder %v794_v38, 2 }
 0x12f   :  { %v783_v48 = vmul.f32 %v782_v51, %v778_v12  ;;  %v790_v29 = vmul.f32 %v789_v14, %v778_v12  ;;  %v902_v24 = vadd.s32 %v901_v39, %v897_v60  ;;  %v970_v5 = vsel %vm969_vm7, %v968_v58, 0 }
 0x130   :  { %v972_v11 = vand.u32 31, %v970_v5  ;;  %vm1568_vm15 = vcmp.lt.s32.totalorder %v1567_v3, 2  ;;  %v965_v16 = vand.u32 8388607, %v958_v36  ;;  %vm1569_vm12 = vcmp.eq.s32.totalorder %v1567_v3, 0 }
 0x131   :  { %v784_v23 = vadd.f32 1.0, %v783_v48  ;;  %v791_v21 = vadd.f32 1.0, %v790_v29  ;;  %v903_v45 = vadd.s32 536870912, %v902_v24  ;;  %vm1572_vm0 = vcmp.eq.s32.totalorder %v1567_v3, 2 }
 0x132   :  { %v973_v17 = vsub.s32 32, %v972_v11  ;;  %vm793_vm1 = vweird.f32 %v2147_v13  ;;  %v966_v10 = vor.u32 8388608, %v965_v16  ;;  %v2663_v54 = vshrl.u32 %v970_v5, 5 }
 0x133   :  { %v792_v9 = vmul.f32 %v791_v21, %v776_v0  ;;  %v800_v12 = vxor.u32 2147483648, %v784_v23  ;;  %v2655_v15 = vshrl.u32 %v903_v45, 30  ;;  %v975_v32 = vshll.u32 %v2080_v25, %v972_v11 }
 0x134   :  { %v976_v56 = vshrl.u32 %v2081_v27, %v973_v17  ;;  %v979_v47 = vshrl.u32 %v2082_v31, %v973_v17  ;;  %v978_v43 = vshll.u32 %v2081_v27, %v972_v11  ;;  %v982_v62 = vshrl.u32 %v2083_v34, %v973_v17 }
 0x135   :  { %v797_v42 = vxor.u32 2147483648, %v792_v9  ;;  %v801_v26 = vsel %vm799_vm14, %v800_v12, %v792_v9  ;;  %v1574_v0 = vsel %vm1572_vm0, %v800_v12, %v792_v9  ;;  %v905_v55 = vshll.u32 %v2655_v15, 30 }
 0x136   :  { %v985_v20 = vshrl.u32 %v2084_v37, %v973_v17  ;;  %v977_v35 = vor.u32 %v976_v56, %v975_v32  ;;  %v981_v52 = vshll.u32 %v2082_v31, %v972_v11  ;;  %v984_v4 = vshll.u32 %v2083_v34, %v972_v11 }
 0x137   :  { %v798_v19 = vsel %vm796_vm13, %v784_v23, %v797_v42  ;;  %v1571_v53 = vsel %vm1569_vm12, %v784_v23, %v797_v42  ;;  %v906_v13 = vsub.s32 %v902_v24, %v905_v55  ;;  %v988_v44 = vshrl.u32 %v2085_v40, %v973_v17 }
 0x138   :  { %v802_v1 = vsel %vm795_vm11, %v798_v19, %v801_v26  ;;  %v1575_v61 = vsel %vm1568_vm15, %v1571_v53, %v1574_v0  ;;  %v2673_v14 = vor.u32 %v979_v47, %v978_v43  ;;  %v987_v6 = vshll.u32 %v2084_v37, %v972_v11 }
 0x139   :  { %v803_v30 = vsel %vm793_vm1, nan, %v802_v1  ;;  %v1576_v33 = vsel %vm793_vm1, nan, %v1575_v61  ;;  %vm907_vm2 = vcmp.lt.s32.totalorder %v906_v13, 0  ;;  %v908_v51 = vsub.s32 0, %v906_v13 }
 0x13a   :  { %v1889_v41 = vsel %vm2649_vm6, %v803_v30, %v1576_v33  ;;  %v986_v7 = vor.u32 %v985_v20, %v984_v4  ;;  %v983_v27 = vor.u32 %v982_v62, %v981_v52  ;;  %v989_v22 = vor.u32 %v988_v44, %v987_v6 }
 0x13b   :  { %1894 = vst [vmem:[#allocation8 + $0x10] sm:$0xff] %v1889_v41  ;;  %v909_v2 = vsel %vm907_vm2, %v908_v51, %v906_v13  ;;  %vm990_vm3 = vcmp.lt.s32.totalorder %v2663_v54, 1  ;;  %vm993_vm4 = vcmp.lt.s32.totalorder %v2663_v54, 4  ;;  %v2678_v31 = vshll.u32 %v966_v10, 8 }
 0x13c   :  { %v910_v48 = vclz %v909_v2  ;;  %v998_v34 = vsel %vm990_vm3, %v977_v35, %v2673_v14  ;;  %v999_v40 = vsel %vm993_vm4, %v986_v7, 920167782  ;;  %v898_v37 = vadd.s32 %v2639_v59, %v2637_v57 }
 0x13d   :  { %vm992_vm5 = vcmp.lt.s32.totalorder %v2663_v54, 3  ;;  %vm991_vm8 = vcmp.lt.s32.totalorder %v2663_v54, 2  ;;  %v1002_v3 = vsel %vm990_vm3, %v2673_v14, %v983_v27  ;;  %v1003_v63 = vsel %vm993_vm4, %v989_v22, 1326507024 }
 0x13e   :  { %v1930_v29 = vadd.s32 4294967294, %v910_v48  ;;  %v1000_v38 = vsel %vm992_vm5, %v983_v27, %v999_v40  ;;  %v1004_v57 = vsel %vm992_vm5, %v986_v7, %v1003_v63  ;;  %v1007_v59 = vand.u32 65535, %v2678_v31 }
 0x13f   :  { %v1001_v58 = vsel %vm991_vm8, %v998_v34, %v1000_v38  ;;  %v1005_v21 = vsel %vm991_vm8, %v1002_v3, %v1004_v57  ;;  %v1008_v12 = vshrl.u32 %v2678_v31, 16  ;;  %v974_v11 = vshrl.u32 %v2080_v25, %v973_v17 }
 0x140   :  { %vm1931_vm9 = vcmp.lt.s32.totalorder %v1930_v29, 0  ;;  %v1031_v60 = vand.u32 65535, %v1001_v58  ;;  %v1032_v8 = vshrl.u32 %v1001_v58, 16  ;;  %v1009_v24 = vand.u32 65535, %v1005_v21 }
 0x141   :  { %v913_v23 = vsel %vm1931_vm9, 0, %v1930_v29  ;;  %v1010_v42 = vshrl.u32 %v1005_v21, 16  ;;  %v994_v30 = vsel %vm990_vm3, %v974_v11, %v977_v35  ;;  %v995_v33 = vsel %vm993_vm4, %v983_v27, 2102212464 }
 0x142   :  { %v914_v39 = vsub.s32 32, %v913_v23  ;;  %v918_v9 = vsub.s32 4294967266, %v913_v23  ;;  %v915_v5 = vshll.u32 %v906_v13, %v913_v23  ;;  %v1034_v45 = vmul.u32 %v1032_v8, %v1007_v59 }
 0x143   :  { %v1013_v19 = vmul.u32 %v1009_v24, %v1008_v12  ;;  %v1035_v53 = vmul.u32 %v1031_v60, %v1008_v12  ;;  %v1012_v0 = vmul.u32 %v1010_v42, %v1007_v59  ;;  %v1011_v55 = vmul.u32 %v1009_v24, %v1007_v59 }
 0x144   :  { %v916_v16 = vshrl.u32 %v898_v37, %v914_v39  ;;  %v919_v26 = vadd.s32 127, %v918_v9  ;;  %v1037_v1 = vshll.u32 %v1034_v45, 16  ;;  %v1014_v10 = vmul.u32 %v1010_v42, %v1008_v12 }
 0x145   :  { %v1015_v41 = vshll.u32 %v1012_v0, 16  ;;  %v1033_v25 = vmul.u32 %v1031_v60, %v1007_v59  ;;  %v1017_v32 = vshll.u32 %v1013_v19, 16  ;;  %v1036_v47 = vmul.u32 %v1032_v8, %v1008_v12 }
 0x146   :  { %v917_v61 = vor.u32 %v916_v16, %v915_v5  ;;  %v920_v56 = vshll.u32 %v919_v26, 23  ;;  %v1039_v13 = vshll.u32 %v1035_v53, 16  ;;  %v996_v7 = vsel %vm992_vm5, %v2673_v14, %v995_v33 }
 0x147   :  { %vm1019_vm10 = vc.u32 %v1011_v55, %v1015_v41  ;;  %v1021_v43 = vadd.s32 %v1015_v41, %v1011_v55  ;;  %vm1041_vm6 = vc.u32 %v1033_v25, %v1037_v1  ;;  %v1043_v62 = vadd.s32 %v1037_v1, %v1033_v25 }
 0x148   :  { %v921_v17 = vor.u32 4788187, %v920_v56  ;;  %v924_v52 = vcvt.s32.f32 %v917_v61  ;;  %v1020_v4 = vsel %vm1019_vm10, 1, %v2086_v46  ;;  %v1042_v35 = vsel %vm1041_vm6, 1, %v2086_v46 }
 0x149   :  { %v1022_v44 = vadd.s32 %v1020_v4, %v1014_v10  ;;  %vm1023_vm7 = vc.u32 %v1021_v43, %v1017_v32  ;;  %v1044_v51 = vadd.s32 %v1042_v35, %v1036_v47  ;;  %vm1045_vm11 = vc.u32 %v1043_v62, %v1039_v13 }
 0x14a   :  { %v922_v20 = vand.u32 2147483647, %v921_v17  ;;  %v1024_v2 = vsel %vm1023_vm7, 1, %v2086_v46  ;;  %v1046_v27 = vsel %vm1045_vm11, 1, %v2086_v46  ;;  %v1016_v22 = vshrl.u32 %v1012_v0, 16 }
 0x14b   :  { %v1026_v48 = vadd.s32 %v1024_v2, %v1022_v44  ;;  %v1038_v34 = vshrl.u32 %v1034_v45, 16  ;;  %v1048_v40 = vadd.s32 %v1046_v27, %v1044_v51  ;;  %vm806_vm13 = vcmp.lt.s32.totalorder %v2503_v18, 0 }
 0x14c   :  { %v925_v6 = vmul.f32 %v924_v52, %v922_v20  ;;  %v1018_v29 = vshrl.u32 %v1013_v19, 16  ;;  %v1040_v3 = vshrl.u32 %v1035_v53, 16  ;;  %vm2719_vm14 = vcmp.le.f32.partialorder %v804_v49, 0.7853982 }
 0x14d   :  { %v1027_v38 = vadd.s32 %v1026_v48, %v1016_v22  ;;  %v1049_v63 = vadd.s32 %v1048_v40, %v1038_v34  ;;  %v928_v14 = vsub.s32 4, %v2655_v15  ;;  %v997_v57 = vsel %vm991_vm8, %v994_v30, %v996_v7 }
 0x14e   :  { %v926_v37 = vxor.u32 2147483648, %v925_v6  ;;  %v1047_v21 = vadd.s32 %v1043_v62, %v1039_v13  ;;  %v1051_v12 = vmul.u32 %v2678_v31, %v997_v57  ;;  %v275_v53 = vadd.s32 384, %v2307_v50 }
 0x14f   :  { %v1028_v23 = vadd.s32 %v1027_v38, %v1018_v29  ;;  %v1050_v60 = vadd.s32 %v1049_v63, %v1040_v3  ;;  %v929_v24 = vsel %vm806_vm13, %v928_v14, %v2655_v15  ;;  %vm947_vm9 = vweird.f32 %v2503_v18 }
 0x150   :  { %v927_v46 = vsel %vm806_vm13, %v926_v37, %v925_v6  ;;  %v931_v45 = vsel %vm2719_vm14, 0, %v929_v24  ;;  %v302_v15 = vand.u32 1, %v275_v53  ;;  %vm960_vm6 = vcmp.lt.s32.totalorder %v2625_v28, 0 }
 0x151   :  { %v930_v59 = vsel %vm2719_vm14, %v2503_v18, %v927_v46  ;;  %vm1053_vm15 = vc.u32 %v1028_v23, %v1047_v21  ;;  %v1054_v49 = vadd.s32 1, %v1050_v60  ;;  %v1721_v31 = vadd.s32 3, %v931_v45 }
 0x152   :  { %v932_v8 = vmul.f32 %v930_v59, %v930_v59  ;;  %v948_v55 = vand.u32 3, %v931_v45  ;;  %vm2738_vm0 = vcmp.eq.s32.totalorder %v302_v15, 1  ;;  %v1052_v40 = vadd.s32 %v1047_v21, %v1028_v23 }
 0x153   :  { %v1055_v54 = vsel %vm1053_vm15, %v1054_v49, %v1050_v60  ;;  %v1722_v17 = vand.u32 3, %v1721_v31  ;;  %vm959_vm7 = vcmp.le.f32.partialorder %v958_v36, 0.7853982  ;;  %v276_v45 = vadd.s32 512, %v2307_v50 }
 0x154   :  { %v933_v39 = vmul.f32 -0.001358992, %v932_v8  ;;  %v940_v9 = vmul.f32 -0.00019511016, %v932_v8  ;;  %v1056_v42 = vadd.s32 %v1055_v54, %v1051_v12  ;;  %vm949_vm1 = vcmp.lt.s32.totalorder %v948_v55, 2 }
 0x155   :  { %vm950_vm2 = vcmp.eq.s32.totalorder %v948_v55, 0  ;;  %vm953_vm3 = vcmp.eq.s32.totalorder %v948_v55, 2  ;;  %vm1723_vm4 = vcmp.lt.s32.totalorder %v1722_v17, 2  ;;  %vm1724_vm5 = vcmp.eq.s32.totalorder %v1722_v17, 0 }
 0x156   :  { %v934_v5 = vadd.f32 0.041655596, %v933_v39  ;;  %v941_v11 = vadd.f32 0.008332121, %v940_v9  ;;  %v1057_v19 = vadd.s32 536870912, %v1056_v42  ;;  %vm1727_vm8 = vcmp.eq.s32.totalorder %v1722_v17, 2 }
 0x158   :  { %v935_v16 = vmul.f32 %v934_v5, %v932_v8  ;;  %v942_v26 = vmul.f32 %v941_v11, %v932_v8  ;;  %v1058_v61 = vshrl.u32 %v1057_v19, 30 }
 0x15a   :  { %v936_v0 = vadd.f32 -0.4999988, %v935_v16  ;;  %v943_v1 = vadd.f32 -0.16666654, %v942_v26  ;;  %v1059_v33 = vshll.u32 %v1058_v61, 30  ;;  %v1082_v49 = vsub.s32 4, %v1058_v61 }
 0x15c   :  { %v937_v56 = vmul.f32 %v936_v0, %v932_v8  ;;  %v944_v30 = vmul.f32 %v943_v1, %v932_v8  ;;  %v1060_v25 = vsub.s32 %v1056_v42, %v1059_v33  ;;  %v1083_v12 = vsel %vm960_vm6, %v1082_v49, %v1058_v61 }
 0x15d   :  { %v1085_v5 = vsel %vm959_vm7, 0, %v1083_v12  ;;  %v309_v0 = vand.u32 1, %v276_v45 }
 0x15e   :  { %v938_v10 = vadd.f32 1.0, %v937_v56  ;;  %v945_v41 = vadd.f32 1.0, %v944_v30  ;;  %vm1061_vm12 = vcmp.lt.s32.totalorder %v1060_v25, 0  ;;  %v1062_v13 = vsub.s32 0, %v1060_v25 }
 0x15f   :  { %v1876_v19 = vadd.s32 3, %v1085_v5  ;;  %v1102_v56 = vand.u32 3, %v1085_v5  ;;  %vm2750_vm11 = vcmp.eq.s32.totalorder %v309_v0, 1 }
 0x160   :  { %v946_v32 = vmul.f32 %v945_v41, %v930_v59  ;;  %v954_v47 = vxor.u32 2147483648, %v938_v10  ;;  %v1063_v20 = vsel %vm1061_vm12, %v1062_v13, %v1060_v25 }
 0x161   :  { %v1064_v52 = vclz %v1063_v20  ;;  %v1877_v30 = vand.u32 3, %v1876_v19  ;;  %vm1103_vm13 = vcmp.lt.s32.totalorder %v1102_v56, 2  ;;  %vm1104_vm14 = vcmp.eq.s32.totalorder %v1102_v56, 0 }
 0x162   :  { %v951_v62 = vxor.u32 2147483648, %v946_v32  ;;  %v955_v35 = vsel %vm953_vm3, %v954_v47, %v946_v32  ;;  %v1729_v51 = vsel %vm1727_vm8, %v954_v47, %v946_v32  ;;  %vm1107_vm15 = vcmp.eq.s32.totalorder %v1102_v56, 2 }
 0x163   :  { %v1933_v2 = vadd.s32 4294967294, %v1064_v52  ;;  %vm1878_vm12 = vcmp.lt.s32.totalorder %v1877_v30, 2 }
 0x164   :  { %v952_v4 = vsel %vm950_vm2, %v938_v10, %v951_v62  ;;  %v1726_v44 = vsel %vm1724_vm5, %v938_v10, %v951_v62  ;;  %vm1101_vm2 = vweird.f32 %v2625_v28 }
 0x165   :  { %v956_v6 = vsel %vm949_vm1, %v952_v4, %v955_v35  ;;  %v1730_v7 = vsel %vm1723_vm4, %v1726_v44, %v1729_v51  ;;  %vm1934_vm10 = vcmp.lt.s32.totalorder %v1933_v2, 0  ;;  %vm1882_vm1 = vcmp.eq.s32.totalorder %v1877_v30, 2 }
 0x166   :  { %v957_v27 = vsel %vm947_vm9, nan, %v956_v6  ;;  %v1731_v22 = vsel %vm947_vm9, nan, %v1730_v7  ;;  %v1067_v34 = vsel %vm1934_vm10, 0, %v1933_v2 }
 0x167   :  { %v1890_v48 = vsel %vm2738_vm0, %v957_v27, %v1731_v22  ;;  %v1068_v37 = vsub.s32 32, %v1067_v34  ;;  %v1072_v29 = vsub.s32 4294967266, %v1067_v34  ;;  %v1069_v38 = vshll.u32 %v1060_v25, %v1067_v34 }
 0x168   :  { %1895 = vst [vmem:[#allocation8 + $0x18] sm:$0xff] %v1890_v48  ;;  %vm1879_vm0 = vcmp.eq.s32.totalorder %v1877_v30, 0 }
 0x169   :  { %v1070_v3 = vshrl.u32 %v1052_v40, %v1068_v37  ;;  %v1073_v63 = vadd.s32 127, %v1072_v29 }
 0x16b   :  { %v1071_v58 = vor.u32 %v1070_v3, %v1069_v38  ;;  %v1074_v46 = vshll.u32 %v1073_v63, 23 }
 0x16d   :  { %v1075_v18 = vor.u32 4788187, %v1074_v46  ;;  %v1078_v57 = vcvt.s32.f32 %v1071_v58 }
 0x16f   :  { %v1076_v14 = vand.u32 2147483647, %v1075_v18 }
 0x171   :  { %v1079_v59 = vmul.f32 %v1078_v57, %v1076_v14 }
 0x173   :  { %v1080_v60 = vxor.u32 2147483648, %v1079_v59 }
 0x175   :  { %v1081_v8 = vsel %vm960_vm6, %v1080_v60, %v1079_v59 }
 0x176   :  { %v1084_v23 = vsel %vm959_vm7, %v2625_v28, %v1081_v8 }
 0x177   :  { %v1086_v21 = vmul.f32 %v1084_v23, %v1084_v23 }
 0x179   :  { %v1087_v39 = vmul.f32 -0.001358992, %v1086_v21  ;;  %v1094_v9 = vmul.f32 -0.00019511016, %v1086_v21 }
 0x17b   :  { %v1088_v24 = vadd.f32 0.041655596, %v1087_v39  ;;  %v1095_v54 = vadd.f32 0.008332121, %v1094_v9 }
 0x17d   :  { %v1089_v11 = vmul.f32 %v1088_v24, %v1086_v21  ;;  %v1096_v42 = vmul.f32 %v1095_v54, %v1086_v21 }
 0x17f   :  { %v1090_v16 = vadd.f32 -0.4999988, %v1089_v11  ;;  %v1097_v26 = vadd.f32 -0.16666654, %v1096_v42 }
 0x181   :  { %v1091_v53 = vmul.f32 %v1090_v16, %v1086_v21  ;;  %v1098_v36 = vmul.f32 %v1097_v26, %v1086_v21 }
 0x183   :  { %v1092_v1 = vadd.f32 1.0, %v1091_v53  ;;  %v1099_v31 = vadd.f32 1.0, %v1098_v36 }
 0x185   :  { %v1100_v33 = vmul.f32 %v1099_v31, %v1084_v23  ;;  %v1108_v15 = vxor.u32 2147483648, %v1092_v1 }
 0x187   :  { %v1105_v55 = vxor.u32 2147483648, %v1100_v33  ;;  %v1109_v10 = vsel %vm1107_vm15, %v1108_v15, %v1100_v33  ;;  %v1884_v25 = vsel %vm1882_vm1, %v1108_v15, %v1100_v33 }
 0x189   :  { %v1106_v50 = vsel %vm1104_vm14, %v1092_v1, %v1105_v55  ;;  %v1881_v41 = vsel %vm1879_vm0, %v1092_v1, %v1105_v55 }
 0x18a   :  { %v1110_v17 = vsel %vm1103_vm13, %v1106_v50, %v1109_v10  ;;  %v1885_v32 = vsel %vm1878_vm12, %v1881_v41, %v1884_v25 }
 0x18b   :  { %v1111_v47 = vsel %vm1101_vm2, nan, %v1110_v17  ;;  %v1886_v13 = vsel %vm1101_vm2, nan, %v1885_v32 }
 0x18c   :  { %v1891_v43 = vsel %vm2750_vm11, %v1111_v47, %v1886_v13 }
 0x18d   :  { %1896 = vst [vmem:[#allocation8 + $0x20] sm:$0xff] %v1891_v43 }
 0x18e   :  { %1907 = dma.vmem_to_hbm [thread:$0]  %s1903_s2, 640, %s1905_s30, [#allocation4]  }
 0x18f   :  { %2073 = dma.done.wait [#allocation4], 640  }
 0x190   :  { %2074 = vsyncadd [#allocation4], 4294966656 }
 0x191   :  { %1912 = vsyncpa [#allocation3], 1 }
 0x192   :  { %1913 = vsyncpa [#allocation6], 1 }
 0x193   :  { %1914 = vsyncpa [#allocation4], 1 }

</bundles_post_ra>
